<compile_context>
chip_gen: v7x
topology: tpu7x:2x2x1
jax: 0.10.0
libtpu: 0.0.40
codegen_flags: <defaults>
</compile_context>

<pallas_src>
import functools
import math

import jax
import jax.numpy as jnp
from jax.experimental import pallas as pl
from jax.experimental.pallas import tpu as pltpu

_EPS = 1e-5  # torch.nn.LayerNorm default eps


# ----------------------------------------------------------------------------
# In-kernel math helpers
# ----------------------------------------------------------------------------
def _erf(x):
    # Abramowitz & Stegun 7.1.26 rational approximation (|err| < 1.5e-7, i.e.
    # float32-exact) -> reproduces torch.nn.GELU's exact-erf formulation using
    # only Mosaic-supported elementwise ops (exp goes to the EUP).
    a1, a2, a3, a4, a5 = 0.254829592, -0.284496736, 1.421413741, -1.453152027, 1.061405429
    p = 0.3275911
    s = jnp.where(x >= 0.0, 1.0, -1.0)
    ax = jnp.abs(x)
    t = 1.0 / (1.0 + p * ax)
    poly = ((((a5 * t + a4) * t + a3) * t + a2) * t + a1) * t
    return s * (1.0 - poly * jnp.exp(-ax * ax))


def _gelu(x):
    return 0.5 * x * (1.0 + _erf(x * (1.0 / math.sqrt(2.0))))


# ----------------------------------------------------------------------------
# Fused DownSampling kernel: LayerNorm(GELU(x @ W.T + b)) * gamma + beta
# ----------------------------------------------------------------------------
def _downsampling_kernel(x_ref, w_ref, b_ref, g_ref, bb_ref, o_ref, acc_ref,
                         *, use_bf16):
    kk = pl.program_id(1)

    @pl.when(kk == 0)
    def _():
        acc_ref[...] = jnp.zeros_like(acc_ref)

    x = x_ref[...]
    w = w_ref[...]
    if use_bf16:
        x = x.astype(jnp.bfloat16)
        w = w.astype(jnp.bfloat16)
    # x:[tm,tk] contracted with w:[n_out,tk] on their last axes  ==  x @ W.T
    acc_ref[...] += jax.lax.dot_general(
        x, w, (((1,), (1,)), ((), ())), preferred_element_type=jnp.float32)

    @pl.when(kk == pl.num_programs(1) - 1)
    def _():
        y = acc_ref[...] + b_ref[...]          # bias
        y = _gelu(y)                           # exact-erf GELU
        mu = jnp.mean(y, axis=-1, keepdims=True)
        var = jnp.mean(jnp.square(y - mu), axis=-1, keepdims=True)
        y = (y - mu) * jax.lax.rsqrt(var + _EPS)
        o_ref[...] = (y * g_ref[...] + bb_ref[...]).astype(o_ref.dtype)
        # TODO(synk): Dropout in FClayer has p=0 here (Identity); training-mode
        # stochastic dropout is intentionally not implemented.


# ----------------------------------------------------------------------------
# Wrapper: tiling choice + padding + pallas_call
# ----------------------------------------------------------------------------
def _round_up(x, m):
    return (x + m - 1) // m * m


def _choose_tiles(m, k, n, budget_bytes=12 << 20):
    # Double-buffered input/output blocks + f32 accumulator must sit well under
    # the default scoped-VMEM limit (32 MiB on v6e/v7x; v7x physical VMEM is
    # only 64 MiB) -> budget ~12 MiB.
    def need(tm, tk):
        return 4 * (2 * tm * tk        # x blocks (double-buffered)
                    + 2 * n * tk       # weight blocks (double-buffered)
                    + 3 * tm * n       # out blocks + accumulator
                    + 6 * n)           # bias / gamma / beta
    tm = min(512, _round_up(m, 8))
    tk = k                             # keep full reduction dim if it fits
    while need(tm, tk) > budget_bytes and tk > 128:
        tk = max(128, _round_up(tk // 2, 128))
    while need(tm, tk) > budget_bytes and tm > 8:
        tm = max(8, tm // 2)
    return tm, tk


def downsampling(x, params, *, use_bf16=False, tm=None, tk=None):
    """DownSampling.forward: LayerNorm(GELU(Linear(x)))."""
    w, b, gamma, beta = params["w"], params["b"], params["gamma"], params["beta"]
    lead = x.shape[:-1]
    k = x.shape[-1]
    n = w.shape[0]                      # n_out = n_in // 2
    x2 = x.reshape(-1, k)
    m = x2.shape[0]

    atm, atk = _choose_tiles(m, k, n)
    tm = atm if tm is None else tm
    tk = atk if tk is None else tk

    m_pad = _round_up(m, tm)
    k_pad = _round_up(k, tk)
    if m_pad != m or k_pad != k:
        x2 = jnp.pad(x2, ((0, m_pad - m), (0, k_pad - k)))
    if k_pad != k:
        w = jnp.pad(w, ((0, 0), (0, k_pad - k)))

    grid = (m_pad // tm, k_pad // tk)   # rows parallel, K reduction last

    out = pl.pallas_call(
        functools.partial(_downsampling_kernel, use_bf16=use_bf16),
        out_shape=jax.ShapeDtypeStruct((m_pad, n), x.dtype),
        grid_spec=pltpu.PrefetchScalarGridSpec(
            num_scalar_prefetch=0,
            grid=grid,
            in_specs=[
                pl.BlockSpec((tm, tk), lambda i, kk: (i, kk)),   # x tile
                pl.BlockSpec((n, tk), lambda i, kk: (0, kk)),    # W tile (PyTorch layout)
                pl.BlockSpec((1, n), lambda i, kk: (0, 0)),      # bias
                pl.BlockSpec((1, n), lambda i, kk: (0, 0)),      # ln gamma
                pl.BlockSpec((1, n), lambda i, kk: (0, 0)),      # ln beta
            ],
            out_specs=pl.BlockSpec((tm, n), lambda i, kk: (i, 0)),
            scratch_shapes=[pltpu.VMEM((tm, n), jnp.float32)],   # f32 accumulator
        ),
        compiler_params=pltpu.CompilerParams(
            dimension_semantics=("parallel", "arbitrary")),
    )(x2, w, b.reshape(1, n), gamma.reshape(1, n), beta.reshape(1, n))

    out = out[:m] if m_pad != m else out
    return out.reshape(*lead, n)


# ----------------------------------------------------------------------------
# Parameters + pure-JAX reference
# ----------------------------------------------------------------------------
def init_downsampling(key, n_in):
    n_out = n_in // 2
    kw, kb = jax.random.split(key)
    bound = 1.0 / math.sqrt(n_in)       # nn.Linear default-style init
    return {
        "w": jax.random.uniform(kw, (n_out, n_in), jnp.float32, -bound, bound),
        "b": jax.random.uniform(kb, (n_out,), jnp.float32, -bound, bound),
        "gamma": jnp.ones((n_out,), jnp.float32),
        "beta": jnp.zeros((n_out,), jnp.float32),
    }


def downsampling_ref(x, params):
    y = x @ params["w"].T + params["b"]
    y = jax.nn.gelu(y, approximate=False)       # torch.nn.GELU default (exact erf)
    mu = y.mean(-1, keepdims=True)
    var = ((y - mu) ** 2).mean(-1, keepdims=True)
    return (y - mu) / jnp.sqrt(var + _EPS) * params["gamma"] + params["beta"]


# ----------------------------------------------------------------------------
if __name__ == "__main__":
    key = jax.random.PRNGKey(0)
    kx, kp, kx2, kp2 = jax.random.split(key, 4)

    # Primary case: n_in=256 -> n_out=128 (lane-dense output, as recommended).
    B, n_in = 64, 256
    params = init_downsampling(kp, n_in)
    x = jax.random.normal(kx, (B, n_in), jnp.float32)
    ref = downsampling_ref(x, params)

    # (a) default tiling (single block at this size), f32 MXU path
    out = downsampling(x, params)
    jax.block_until_ready(out)
    assert out.shape == (B, n_in // 2)
    assert float(jnp.max(jnp.abs(out - ref))) < 1e-2

    # (b) force a 2x2 grid to exercise the row-tiling + K-accumulation path
    out_tiled = downsampling(x, params, tm=32, tk=128)
    jax.block_until_ready(out_tiled)
    assert float(jnp.max(jnp.abs(out_tiled - ref))) < 1e-2

    # (c) bf16 MXU operands (v5e/v6e/v7x fast path), f32 accumulation
    out_bf16 = downsampling(x, params, use_bf16=True)
    jax.block_until_ready(out_bf16)
    assert float(jnp.max(jnp.abs(out_bf16 - ref))) < 5e-2

    # (d) ragged, non-128-aligned shapes with a batched leading dim (padding path)
    B2, S2, n_in2 = 3, 10, 96
    params2 = init_downsampling(kp2, n_in2)
    x2 = jax.random.normal(kx2, (B2, S2, n_in2), jnp.float32)
    out2 = downsampling(x2, params2)
    jax.block_until_ready(out2)
    assert out2.shape == (B2, S2, n_in2 // 2)
    assert float(jnp.max(jnp.abs(out2 - downsampling_ref(x2, params2)))) < 1e-2

    print("KERNEL_OK")
</pallas_src>

<mosaic_0001>
module attributes {stable_mosaic.version = 11 : i64} {
  func.func @_downsampling_kernel(%arg0: i32, %arg1: i32, %arg2: memref<64x256xf32, #tpu.memory_space<vmem>>, %arg3: memref<128x256xf32, #tpu.memory_space<vmem>>, %arg4: memref<1x128xf32, #tpu.memory_space<vmem>>, %arg5: memref<1x128xf32, #tpu.memory_space<vmem>>, %arg6: memref<1x128xf32, #tpu.memory_space<vmem>>, %arg7: memref<64x128xf32, #tpu.memory_space<vmem>>, %arg8: memref<64x128xf32, #tpu.memory_space<vmem>>) attributes {dimension_semantics = [#tpu.dimension_semantics<parallel>, #tpu.dimension_semantics<arbitrary>], iteration_bounds = array<i64: 1, 1>, scalar_prefetch = 0 : i64, scratch_operands = 1 : i64, tpu.core_type = #tpu.core_type<tc>, window_params = [{transform_indices = @transform_0, window_bounds = array<i64: 64, 256>}, {transform_indices = @transform_1, window_bounds = array<i64: 128, 256>}, {pipeline_mode = #tpu.pipeline_mode<synchronous>, transform_indices = @transform_2, window_bounds = array<i64: 1, 128>}, {pipeline_mode = #tpu.pipeline_mode<synchronous>, transform_indices = @transform_3, window_bounds = array<i64: 1, 128>}, {pipeline_mode = #tpu.pipeline_mode<synchronous>, transform_indices = @transform_4, window_bounds = array<i64: 1, 128>}, {transform_indices = @transform_5, window_bounds = array<i64: 64, 128>}]} {
    %c0_i32 = arith.constant 0 : i32
    %0 = arith.cmpi eq, %arg1, %c0_i32 : i32
    %1 = arith.extui %0 : i1 to i32
    %c0_i32_0 = arith.constant 0 : i32
    %2 = arith.cmpi ne, %1, %c0_i32_0 : i32
    scf.if %2 {
      %cst_10 = arith.constant 0.000000e+00 : f32
      %12 = vector.broadcast %cst_10 : f32 to vector<64x128xf32>
      %c0_11 = arith.constant 0 : index
      %c0_12 = arith.constant 0 : index
      %13 = vector.load %arg8[%c0_11, %c0_12] : memref<64x128xf32, #tpu.memory_space<vmem>>, vector<64x128xf32>
      tpu.vector_store %arg8[%c0_11, %c0_12], %12 {strides = array<i32>} : memref<64x128xf32, #tpu.memory_space<vmem>>, vector<64x128xf32>,
    } else {
    }
    %c0 = arith.constant 0 : index
    %c0_1 = arith.constant 0 : index
    %3 = vector.load %arg2[%c0, %c0_1] : memref<64x256xf32, #tpu.memory_space<vmem>>, vector<64x256xf32>
    %c0_2 = arith.constant 0 : index
    %c0_3 = arith.constant 0 : index
    %4 = vector.load %arg3[%c0_2, %c0_3] : memref<128x256xf32, #tpu.memory_space<vmem>>, vector<128x256xf32>
    %c0_4 = arith.constant 0 : index
    %c0_5 = arith.constant 0 : index
    %5 = vector.load %arg8[%c0_4, %c0_5] : memref<64x128xf32, #tpu.memory_space<vmem>>, vector<64x128xf32>
    %cst = arith.constant dense<0.000000e+00> : vector<64x128xf32>
    %6 = tpu.matmul %3, %4, %cst {dimension_numbers = #tpu.dot_dimension_numbers<[1], [1], [0], [0], [0, 0, 1, 0], [], []>} : vector<64x256xf32>, vector<128x256xf32>, vector<64x128xf32> -> vector<64x128xf32>
    %7 = arith.addf %5, %6 : vector<64x128xf32>
    %c0_6 = arith.constant 0 : index
    %c0_7 = arith.constant 0 : index
    %8 = vector.load %arg8[%c0_6, %c0_7] : memref<64x128xf32, #tpu.memory_space<vmem>>, vector<64x128xf32>
    tpu.vector_store %arg8[%c0_6, %c0_7], %7 {strides = array<i32>} : memref<64x128xf32, #tpu.memory_space<vmem>>, vector<64x128xf32>,
    %c0_i32_8 = arith.constant 0 : i32
    %9 = arith.cmpi eq, %arg1, %c0_i32_8 : i32
    %10 = arith.extui %9 : i1 to i32
    %c0_i32_9 = arith.constant 0 : i32
    %11 = arith.cmpi ne, %10, %c0_i32_9 : i32
    scf.if %11 {
      %c0_10 = arith.constant 0 : index
      %c0_11 = arith.constant 0 : index
      %12 = vector.load %arg8[%c0_10, %c0_11] : memref<64x128xf32, #tpu.memory_space<vmem>>, vector<64x128xf32>
      %c0_12 = arith.constant 0 : index
      %c0_13 = arith.constant 0 : index
      %13 = vector.load %arg4[%c0_12, %c0_13] : memref<1x128xf32, #tpu.memory_space<vmem>>, vector<1x128xf32>
      %14 = vector.broadcast %13 : vector<1x128xf32> to vector<64x128xf32>
      %15 = arith.addf %12, %14 : vector<64x128xf32>
      %cst_14 = arith.constant 5.000000e-01 : f32
      %16 = vector.broadcast %cst_14 : f32 to vector<64x128xf32>
      %17 = arith.mulf %16, %15 : vector<64x128xf32>
      %cst_15 = arith.constant 0.707106769 : f32
      %18 = vector.broadcast %cst_15 : f32 to vector<64x128xf32>
      %19 = arith.mulf %15, %18 : vector<64x128xf32>
      %cst_16 = arith.constant 0.000000e+00 : f32
      %20 = vector.broadcast %cst_16 : f32 to vector<64x128xf32>
      %21 = arith.cmpf oge, %19, %20 : vector<64x128xf32>
      %cst_17 = arith.constant 1.000000e+00 : f32
      %cst_18 = arith.constant -1.000000e+00 : f32
      %22 = vector.broadcast %cst_17 : f32 to vector<64x128xf32>
      %23 = vector.broadcast %cst_18 : f32 to vector<64x128xf32>
      %24 = arith.select %21, %22, %23 : vector<64x128xi1>, vector<64x128xf32>
      %25 = math.absf %19 : vector<64x128xf32>
      %cst_19 = arith.constant 0.327591091 : f32
      %26 = vector.broadcast %cst_19 : f32 to vector<64x128xf32>
      %27 = arith.mulf %26, %25 : vector<64x128xf32>
      %cst_20 = arith.constant 1.000000e+00 : f32
      %28 = vector.broadcast %cst_20 : f32 to vector<64x128xf32>
      %29 = arith.addf %28, %27 : vector<64x128xf32>
      %cst_21 = arith.constant 1.000000e+00 : f32
      %30 = vector.broadcast %cst_21 : f32 to vector<64x128xf32>
      %31 = arith.divf %30, %29 : vector<64x128xf32>
      %cst_22 = arith.constant 1.06140542 : f32
      %32 = vector.broadcast %cst_22 : f32 to vector<64x128xf32>
      %33 = arith.mulf %32, %31 : vector<64x128xf32>
      %cst_23 = arith.constant -1.45315206 : f32
      %34 = vector.broadcast %cst_23 : f32 to vector<64x128xf32>
      %35 = arith.addf %33, %34 : vector<64x128xf32>
      %36 = arith.mulf %35, %31 : vector<64x128xf32>
      %cst_24 = arith.constant 1.42141378 : f32
      %37 = vector.broadcast %cst_24 : f32 to vector<64x128xf32>
      %38 = arith.addf %36, %37 : vector<64x128xf32>
      %39 = arith.mulf %38, %31 : vector<64x128xf32>
      %cst_25 = arith.constant -0.284496725 : f32
      %40 = vector.broadcast %cst_25 : f32 to vector<64x128xf32>
      %41 = arith.addf %39, %40 : vector<64x128xf32>
      %42 = arith.mulf %41, %31 : vector<64x128xf32>
      %cst_26 = arith.constant 0.254829586 : f32
      %43 = vector.broadcast %cst_26 : f32 to vector<64x128xf32>
      %44 = arith.addf %42, %43 : vector<64x128xf32>
      %45 = arith.mulf %44, %31 : vector<64x128xf32>
      %cst_27 = arith.constant 0.000000e+00 : f32
      %46 = vector.broadcast %cst_27 : f32 to vector<64x128xf32>
      %47 = arith.subf %46, %25 : vector<64x128xf32>
      %48 = arith.mulf %47, %25 : vector<64x128xf32>
      %49 = math.exp %48 : vector<64x128xf32>
      %50 = arith.mulf %45, %49 : vector<64x128xf32>
      %cst_28 = arith.constant 1.000000e+00 : f32
      %51 = vector.broadcast %cst_28 : f32 to vector<64x128xf32>
      %52 = arith.subf %51, %50 : vector<64x128xf32>
      %53 = arith.mulf %24, %52 : vector<64x128xf32>
      %cst_29 = arith.constant 1.000000e+00 : f32
      %54 = vector.broadcast %cst_29 : f32 to vector<64x128xf32>
      %55 = arith.addf %54, %53 : vector<64x128xf32>
      %56 = arith.mulf %17, %55 : vector<64x128xf32>
      %cst_30 = arith.constant dense<0.000000e+00> : vector<64xf32>
      %57 = vector.multi_reduction <add>, %56, %cst_30 [1] : vector<64x128xf32> to vector<64xf32>
      %58 = vector.shape_cast %57 : vector<64xf32> to vector<64x1xf32>
      %cst_31 = arith.constant 1.280000e+02 : f32
      %59 = vector.broadcast %cst_31 : f32 to vector<64x1xf32>
      %60 = arith.divf %58, %59 : vector<64x1xf32>
      %61 = vector.broadcast %60 : vector<64x1xf32> to vector<64x128xf32>
      %62 = arith.subf %56, %61 : vector<64x128xf32>
      %63 = arith.mulf %62, %62 : vector<64x128xf32>
      %cst_32 = arith.constant dense<0.000000e+00> : vector<64xf32>
      %64 = vector.multi_reduction <add>, %63, %cst_32 [1] : vector<64x128xf32> to vector<64xf32>
      %65 = vector.shape_cast %64 : vector<64xf32> to vector<64x1xf32>
      %cst_33 = arith.constant 1.280000e+02 : f32
      %66 = vector.broadcast %cst_33 : f32 to vector<64x1xf32>
      %67 = arith.divf %65, %66 : vector<64x1xf32>
      %68 = vector.broadcast %60 : vector<64x1xf32> to vector<64x128xf32>
      %69 = arith.subf %56, %68 : vector<64x128xf32>
      %cst_34 = arith.constant 9.99999974E-6 : f32
      %70 = vector.broadcast %cst_34 : f32 to vector<64x1xf32>
      %71 = arith.addf %67, %70 : vector<64x1xf32>
      %72 = math.rsqrt %71 : vector<64x1xf32>
      %73 = vector.broadcast %72 : vector<64x1xf32> to vector<64x128xf32>
      %74 = arith.mulf %69, %73 : vector<64x128xf32>
      %c0_35 = arith.constant 0 : index
      %c0_36 = arith.constant 0 : index
      %75 = vector.load %arg5[%c0_35, %c0_36] : memref<1x128xf32, #tpu.memory_space<vmem>>, vector<1x128xf32>
      %76 = vector.broadcast %75 : vector<1x128xf32> to vector<64x128xf32>
      %77 = arith.mulf %74, %76 : vector<64x128xf32>
      %c0_37 = arith.constant 0 : index
      %c0_38 = arith.constant 0 : index
      %78 = vector.load %arg6[%c0_37, %c0_38] : memref<1x128xf32, #tpu.memory_space<vmem>>, vector<1x128xf32>
      %79 = vector.broadcast %78 : vector<1x128xf32> to vector<64x128xf32>
      %80 = arith.addf %77, %79 : vector<64x128xf32>
      %c0_39 = arith.constant 0 : index
      %c0_40 = arith.constant 0 : index
      %81 = vector.load %arg7[%c0_39, %c0_40] : memref<64x128xf32, #tpu.memory_space<vmem>>, vector<64x128xf32>
      tpu.vector_store %arg7[%c0_39, %c0_40], %80 {strides = array<i32>} : memref<64x128xf32, #tpu.memory_space<vmem>>, vector<64x128xf32>,
    } else {
    }
    return
  }
  func.func @transform_0(%arg0: i32, %arg1: i32) -> (i32, i32) {
    %c0_i32 = arith.constant 0 : i32
    return %arg0, %arg1 : i32, i32
  }
  func.func @transform_1(%arg0: i32, %arg1: i32) -> (i32, i32) {
    %c0_i32 = arith.constant 0 : i32
    %c0_i32_0 = arith.constant 0 : i32
    return %c0_i32, %arg1 : i32, i32
  }
  func.func @transform_2(%arg0: i32, %arg1: i32) -> (i32, i32) {
    %c0_i32 = arith.constant 0 : i32
    %c0_i32_0 = arith.constant 0 : i32
    %c0_i32_1 = arith.constant 0 : i32
    return %c0_i32, %c0_i32_0 : i32, i32
  }
  func.func @transform_3(%arg0: i32, %arg1: i32) -> (i32, i32) {
    %c0_i32 = arith.constant 0 : i32
    %c0_i32_0 = arith.constant 0 : i32
    %c0_i32_1 = arith.constant 0 : i32
    return %c0_i32, %c0_i32_0 : i32, i32
  }
  func.func @transform_4(%arg0: i32, %arg1: i32) -> (i32, i32) {
    %c0_i32 = arith.constant 0 : i32
    %c0_i32_0 = arith.constant 0 : i32
    %c0_i32_1 = arith.constant 0 : i32
    return %c0_i32, %c0_i32_0 : i32, i32
  }
  func.func @transform_5(%arg0: i32, %arg1: i32) -> (i32, i32) {
    %c0_i32 = arith.constant 0 : i32
    %c0_i32_0 = arith.constant 0 : i32
    return %arg0, %c0_i32 : i32, i32
  }
}

</mosaic_0001>

<bundles_post_ra>
// kernel: tpu_custom_call.1
= control target key start
LH: loop header
LB: loop body
LE: loop exit
PB: predicated region body
PF: predicated region fallthrough
CT: control target
= control target key end

     0   :  { %10 = vsyncpa [#allocation4], 0  ;;  %s1069_s0 = inlined_call_operand.hbm [shape: f32[64,256], index: 0, kind: input, shape index: {}]   ;;  %s1070_s1 = inlined_call_operand.hbm [shape: f32[128,256], index: 1, kind: input, shape index: {}]   ;;  %s1071_s2 = inlined_call_operand.vmem [shape: f32[1,128], index: 2, kind: input, shape index: {}]   ;;  %s1072_s3 = inlined_call_operand.vmem [shape: f32[1,128], index: 3, kind: input, shape index: {}]   ;;  %s1073_s4 = inlined_call_operand.vmem [shape: f32[1,128], index: 4, kind: input, shape index: {}]   ;;  %s1074_s5 = inlined_call_operand.hbm [shape: f32[64,128], index: 5, kind: output, shape index: {}]  }
   0x1   :  { %11 = vsyncpa [#allocation7], 0 }
   0x2   :  { %12 = vsyncpa [#allocation5], 0  ;;  %s804_s18 = smov [#allocation3]   ;;  %s732_s22 = scalar_lea.hbm %s1069_s0, 2048 }
   0x3   :  { %s18_s19 = sshll.u32 %s804_s18, 4  ;;  %p733_p0 = scmp.ne.s32.totalorder %s1069_s0, %s732_s22  ;;  %s19_s19 = int_to_ptr.vmem [resolvable:$true] %s18_s19 }
   0x4   :  { %p736_p1 = scmp.lt.u32.totalorder %s732_s22, %s1069_s0 }
   0x6   :  { %p738_p2 = pnand %p736_p1, %p733_p0 }
   0x8   :  { %741 = shalt.err (!%p738_p2)
}
   0x9   :  { %s742_s27 = scalar_lea.vmem %s19_s19, 2048  ;;  %p747_p4 = scmp.lt.s32.totalorder %s19_s19, %s19_s19 }
   0xa   :  { %p743_p3 = scmp.ne.s32.totalorder %s19_s19, %s742_s27  ;;  %p748_p5 = scmp.lt.s32.totalorder %s742_s27, %s742_s27 }
   0xc   :  { %p749_p6 = por %p748_p5, %p747_p4 }
   0xe   :  { %p750_p7 = pnand %p749_p6, %p743_p3 }
  0x10   :  { %753 = shalt.err (!%p750_p7)
}
  0x11   :  { %s805_s28 = smov 256   ;;  %s806_s29 = smov 16  }
  0x12   :  { %24 = dma.hbm_to_vmem [thread:$0]  %s1069_s0, 2048, %s19_s19, [#allocation4], %s805_s28, %s805_s28, %s806_s29  }
  0x13   :  { %s807_s7 = smov [#allocation6]   ;;  %s754_s11 = scalar_lea.hbm %s1070_s1, 4096 }
  0x14   :  { %s30_s8 = sshll.u32 %s807_s7, 4  ;;  %p755_p8 = scmp.ne.s32.totalorder %s1070_s1, %s754_s11  ;;  %s31_s8 = int_to_ptr.vmem [resolvable:$true] %s30_s8 }
  0x15   :  { %p758_p9 = scmp.lt.u32.totalorder %s754_s11, %s1070_s1 }
  0x17   :  { %p760_p10 = pnand %p758_p9, %p755_p8 }
  0x19   :  { %763 = shalt.err (!%p760_p10)
}
  0x1a   :  { %s764_s16 = scalar_lea.vmem %s31_s8, 4096  ;;  %p769_p12 = scmp.lt.s32.totalorder %s31_s8, %s31_s8 }
  0x1b   :  { %p765_p11 = scmp.ne.s32.totalorder %s31_s8, %s764_s16  ;;  %p770_p13 = scmp.lt.s32.totalorder %s764_s16, %s764_s16 }
  0x1d   :  { %p771_p0 = por %p770_p13, %p769_p12 }
  0x1f   :  { %p772_p1 = pnand %p771_p0, %p765_p11 }
  0x21   :  { %775 = shalt.err (!%p772_p1)
}
  0x22   :  { %36 = dma.hbm_to_vmem [thread:$0]  %s1070_s1, 4096, %s31_s8, [#allocation7], %s805_s28, %s805_s28, %s806_s29  }
  0x23   :  { %798 = dma.done.wait [#allocation4], 2048  }
  0x24   :  { %799 = vsyncadd [#allocation4], 4294965248 }
  0x25   :  { %800 = dma.done.wait [#allocation7], 4096  }
  0x26   :  { %801 = vsyncadd [#allocation7], 4294963200  ;;  %v78_v0 = vld [vmem:[#allocation6 + $0x8] sm:$0xff]  ;;  %v80_v1 = vld [vmem:[#allocation6 + $0x18] sm:$0xff] }
  0x27   :  { %v77_v2 = vld [vmem:[#allocation6] sm:$0xff]  ;;  %v628_v3 = vpack.c.bf16 %v80_v1, %v78_v0  ;;  %v79_v4 = vld [vmem:[#allocation6 + $0x10] sm:$0xff]  ;;  %v82_v5 = vld [vmem:[#allocation6 + $0x28] sm:$0xff] }
  0x28   :  { %v84_v6 = vld [vmem:[#allocation6 + $0x38] sm:$0xff]  ;;  %v630_v7 = vpack.c.bf16 %v79_v4, %v77_v2  ;;  %v81_v9 = vld [vmem:[#allocation6 + $0x20] sm:$0xff]  ;;  %v83_v10 = vld [vmem:[#allocation6 + $0x30] sm:$0xff] }
  0x29   :  { %v632_v8 = vpack.c.bf16 %v84_v6, %v82_v5  ;;  %629 = vmatprep.subr.bf16.mxu0 %v628_v3  ;;  %660 = vmatprep.subr.bf16.mxu1 %v628_v3  ;;  %v86_v11 = vld [vmem:[#allocation6 + $0x48] sm:$0xff]  ;;  %v88_v12 = vld [vmem:[#allocation6 + $0x58] sm:$0xff]  ;;  %v634_v13 = vpack.c.bf16 %v83_v10, %v81_v9  ;;  %v85_v17 = vld [vmem:[#allocation6 + $0x40] sm:$0xff] }
  0x2a   :  { %631 = vmatpush1.bf16.xpose.msra.mxu0 %v630_v7  ;;  %668 = vmatpush1.bf16.xpose.msra.mxu1 %v630_v7  ;;  %v636_v14 = vpack.c.bf16 %v88_v12, %v86_v11  ;;  %v62_v15 = vld [vmem:[#allocation3 + $0x8] sm:$0xff]  ;;  %v87_v18 = vld [vmem:[#allocation6 + $0x50] sm:$0xff]  ;;  %v92_v20 = vld [vmem:[#allocation6 + $0x78] sm:$0xff] }
  0x2b   :  { %633 = vmatprep.subr.bf16.mxu0 %v632_v8  ;;  %661 = vmatprep.subr.bf16.mxu1 %v632_v8  ;;  %v70_v16 = vld [vmem:[#allocation3 + $0x48] sm:$0xff]  ;;  %v638_v21 = vpack.c.bf16 %v87_v18, %v85_v17  ;;  %v89_v23 = vld [vmem:[#allocation6 + $0x60] sm:$0xff]  ;;  %v91_v24 = vld [vmem:[#allocation6 + $0x70] sm:$0xff] }
  0x2c   :  { %181 = vmatprep.mubr.f32.mxu0 %v62_v15  ;;  %v90_v19 = vld [vmem:[#allocation6 + $0x68] sm:$0xff]  ;;  %201 = vmatprep.mubr.f32.mxu1 %v70_v16  ;;  %v96_v26 = vld [vmem:[#allocation6 + $0x98] sm:$0xff]  ;;  %v642_v27 = vpack.c.bf16 %v91_v24, %v89_v23  ;;  %v93_v29 = vld [vmem:[#allocation6 + $0x80] sm:$0xff] }
  0x2d   :  { %v640_v22 = vpack.c.bf16 %v92_v20, %v90_v19  ;;  %v94_v25 = vld [vmem:[#allocation6 + $0x88] sm:$0xff]  ;;  %v95_v30 = vld [vmem:[#allocation6 + $0x90] sm:$0xff]  ;;  %v100_v32 = vld [vmem:[#allocation6 + $0xb8] sm:$0xff] }
  0x2e   :  { %v644_v28 = vpack.c.bf16 %v96_v26, %v94_v25  ;;  %v98_v31 = vld [vmem:[#allocation6 + $0xa8] sm:$0xff]  ;;  %v646_v33 = vpack.c.bf16 %v95_v30, %v93_v29  ;;  %v97_v35 = vld [vmem:[#allocation6 + $0xa0] sm:$0xff]  ;;  %v99_v36 = vld [vmem:[#allocation6 + $0xb0] sm:$0xff] }
  0x2f   :  { %v648_v34 = vpack.c.bf16 %v100_v32, %v98_v31  ;;  %v102_v37 = vld [vmem:[#allocation6 + $0xc8] sm:$0xff]  ;;  %v104_v38 = vld [vmem:[#allocation6 + $0xd8] sm:$0xff]  ;;  %v650_v39 = vpack.c.bf16 %v99_v36, %v97_v35  ;;  %v101_v41 = vld [vmem:[#allocation6 + $0xc0] sm:$0xff] }
  0x30   :  { %v652_v40 = vpack.c.bf16 %v104_v38, %v102_v37  ;;  %v103_v42 = vld [vmem:[#allocation6 + $0xd0] sm:$0xff]  ;;  %v106_v43 = vld [vmem:[#allocation6 + $0xe8] sm:$0xff]  ;;  %v108_v44 = vld [vmem:[#allocation6 + $0xf8] sm:$0xff] }
  0x31   :  { %v654_v45 = vpack.c.bf16 %v103_v42, %v101_v41  ;;  %v656_v46 = vpack.c.bf16 %v108_v44, %v106_v43  ;;  %v105_v47 = vld [vmem:[#allocation6 + $0xe0] sm:$0xff]  ;;  %v107_v48 = vld [vmem:[#allocation6 + $0xf0] sm:$0xff]  ;;  %v64_v52 = vld [vmem:[#allocation3 + $0x18] sm:$0xff] }
  0x32   :  { %635 = vmatpush1.bf16.xpose.msra.mxu0 %v634_v13  ;;  %669 = vmatpush1.bf16.xpose.msra.mxu1 %v634_v13  ;;  %v658_v49 = vpack.c.bf16 %v107_v48, %v105_v47  ;;  %v61_v50 = vld [vmem:[#allocation3] sm:$0xff]  ;;  %v72_v53 = vld [vmem:[#allocation3 + $0x58] sm:$0xff]  ;;  %v63_v54 = vld [vmem:[#allocation3 + $0x10] sm:$0xff] }
  0x33   :  { %637 = vmatprep.subr.bf16.mxu0 %v636_v14  ;;  %662 = vmatprep.subr.bf16.mxu1 %v636_v14  ;;  %v69_v51 = vld [vmem:[#allocation3 + $0x40] sm:$0xff]  ;;  %v71_v55 = vld [vmem:[#allocation3 + $0x50] sm:$0xff]  ;;  %v66_v56 = vld [vmem:[#allocation3 + $0x28] sm:$0xff] }
  0x34   :  { %v74_v57 = vld [vmem:[#allocation3 + $0x68] sm:$0xff]  ;;  %v65_v58 = vld [vmem:[#allocation3 + $0x20] sm:$0xff]  ;;  %v68_v60 = vld [vmem:[#allocation3 + $0x38] sm:$0xff] }
  0x35   :  { %v73_v59 = vld [vmem:[#allocation3 + $0x60] sm:$0xff]  ;;  %v76_v61 = vld [vmem:[#allocation3 + $0x78] sm:$0xff]  ;;  %v67_v62 = vld [vmem:[#allocation3 + $0x30] sm:$0xff] }
  0x36   :  { %v75_v63 = vld [vmem:[#allocation3 + $0x70] sm:$0xff]  ;;  %v625_v0 = vld [vmem:[%s1071_s2] ss:$0 sm:$0xff] }
  0x3a   :  { %639 = vmatpush1.bf16.xpose.msra.mxu0 %v638_v21  ;;  %670 = vmatpush1.bf16.xpose.msra.mxu1 %v638_v21 }
  0x3b   :  { %641 = vmatprep.subr.bf16.mxu0 %v640_v22  ;;  %663 = vmatprep.subr.bf16.mxu1 %v640_v22 }
  0x42   :  { %643 = vmatpush1.bf16.xpose.msra.mxu0 %v642_v27  ;;  %671 = vmatpush1.bf16.xpose.msra.mxu1 %v642_v27 }
  0x43   :  { %645 = vmatprep.subr.bf16.mxu0 %v644_v28  ;;  %664 = vmatprep.subr.bf16.mxu1 %v644_v28 }
  0x4a   :  { %647 = vmatpush1.bf16.xpose.msra.mxu0 %v646_v33  ;;  %672 = vmatpush1.bf16.xpose.msra.mxu1 %v646_v33 }
  0x4b   :  { %649 = vmatprep.subr.bf16.mxu0 %v648_v34  ;;  %665 = vmatprep.subr.bf16.mxu1 %v648_v34 }
  0x52   :  { %651 = vmatpush1.bf16.xpose.msra.mxu0 %v650_v39  ;;  %673 = vmatpush1.bf16.xpose.msra.mxu1 %v650_v39 }
  0x53   :  { %653 = vmatprep.subr.bf16.mxu0 %v652_v40  ;;  %666 = vmatprep.subr.bf16.mxu1 %v652_v40 }
  0x5a   :  { %655 = vmatpush1.bf16.xpose.msra.mxu0 %v654_v45  ;;  %674 = vmatpush1.bf16.xpose.msra.mxu1 %v654_v45 }
  0x5b   :  { %657 = vmatprep.subr.bf16.mxu0 %v656_v46  ;;  %667 = vmatprep.subr.bf16.mxu1 %v656_v46 }
  0x62   :  { %659 = vmatpush1.bf16.xpose.msra.mxu0 %v658_v49  ;;  %675 = vmatpush1.bf16.xpose.msra.mxu1 %v658_v49 }
  0x69   :  { %182 = vmatmul.mubr.f32.vlgmr.msra.gmra.mrb[0].mxu0 %v61_v50  ;;  %202 = vmatmul.mubr.f32.vlgmr.msra.gmra.mrb[0].mxu1 %v69_v51 }
  0x6a   :  { %186 = vmatprep.mubr.f32.mxu0 %v64_v52  ;;  %206 = vmatprep.mubr.f32.mxu1 %v72_v53  ;;  %v808_v53 = vmov -1.0  }
  0x6d   :  { %187 = vmatmul.mubr.f32.gmra.mrb[2].mxu0 %v63_v54  ;;  %207 = vmatmul.mubr.f32.gmra.mrb[2].mxu1 %v71_v55 }
  0x6e   :  { %191 = vmatprep.mubr.f32.mxu0 %v66_v56  ;;  %211 = vmatprep.mubr.f32.mxu1 %v74_v57 }
  0x71   :  { %192 = vmatmul.mubr.f32.gmra.mrb[4].mxu0 %v65_v58  ;;  %212 = vmatmul.mubr.f32.gmra.mrb[4].mxu1 %v73_v59 }
  0x72   :  { %196 = vmatprep.mubr.f32.mxu0 %v68_v60  ;;  %216 = vmatprep.mubr.f32.mxu1 %v76_v61 }
  0x75   :  { %197 = vmatmul.mubr.f32.gmra.mrb[6].mxu0 %v67_v62  ;;  %217 = vmatmul.mubr.f32.gmra.mrb[6].mxu1 %v75_v63 }
 0x13c   :  { %v183_v1 = vpop.f32.mrb[0].mxu0  ;;  %v203_v2 = vpop.f32.mrb[0].mxu1 }
 0x13d   :  { %v256_v3 = vadd.f32 %v625_v0, %v183_v1  ;;  %v260_v4 = vadd.f32 %v625_v0, %v203_v2  ;;  %v185_v5 = vpop.f32.mrb[1].mxu0  ;;  %v205_v6 = vpop.f32.mrb[1].mxu1 }
 0x13f   :  { %v272_v7 = vmul.f32 0.70710677, %v256_v3  ;;  %v869_v8 = vmul.f32 0.70710677, %v260_v4  ;;  %v896_v48 = vmul.f32 0.5, %v256_v3  ;;  %v898_v49 = vmul.f32 0.5, %v260_v4 }
 0x140   :  { %v188_v9 = vpop.f32.mrb[2].mxu0  ;;  %v208_v10 = vpop.f32.mrb[2].mxu1 }
 0x141   :  { %v296_v11 = vand.u32 2147483647, %v272_v7  ;;  %v300_v12 = vand.u32 2147483647, %v869_v8  ;;  %v872_v13 = vadd.f32 %v625_v0, %v188_v9  ;;  %v874_v14 = vadd.f32 %v625_v0, %v208_v10  ;;  %v190_v15 = vpop.f32.mrb[3].mxu0  ;;  %v210_v16 = vpop.f32.mrb[3].mxu1 }
 0x142   :  { %vm280_vm0 = vcmp.ge.f32.partialorder %v272_v7, 0.0  ;;  %vm284_vm1 = vcmp.ge.f32.partialorder %v869_v8, 0.0 }
 0x143   :  { %v304_v17 = vmul.f32 0.3275911, %v296_v11  ;;  %v308_v18 = vmul.f32 0.3275911, %v300_v12  ;;  %v877_v19 = vmul.f32 0.70710677, %v872_v13 }
 0x144   :  { %v880_v20 = vmul.f32 0.70710677, %v874_v14  ;;  %v193_v22 = vpop.f32.mrb[4].mxu0  ;;  %v213_v23 = vpop.f32.mrb[4].mxu1  ;;  %v408_v33 = vsub.f32 0.0, %v296_v11  ;;  %v412_v42 = vsub.f32 0.0, %v300_v12 }
 0x145   :  { %v312_v21 = vadd.f32 1.0, %v304_v17  ;;  %v316_v24 = vadd.f32 1.0, %v308_v18  ;;  %v297_v25 = vand.u32 2147483647, %v877_v19  ;;  %v884_v27 = vadd.f32 %v625_v0, %v193_v22  ;;  %v195_v28 = vpop.f32.mrb[5].mxu0  ;;  %v215_v29 = vpop.f32.mrb[5].mxu1 }
 0x146   :  { %v301_v26 = vand.u32 2147483647, %v880_v20  ;;  %v890_v41 = vadd.f32 %v625_v0, %v213_v23  ;;  %v416_v45 = vmul.f32 %v408_v33, %v296_v11  ;;  %v909_v54 = vsel %vm280_vm0, 1.0, %v808_v53 }
 0x147   :  { %684 = vrcp.f32 %v312_v21  ;;  %v305_v30 = vmul.f32 0.3275911, %v297_v25  ;;  %v887_v34 = vmul.f32 0.70710677, %v884_v27  ;;  %v409_v46 = vsub.f32 0.0, %v297_v25 }
 0x148   :  { %v309_v31 = vmul.f32 0.3275911, %v301_v26  ;;  %v198_v32 = vpop.f32.mrb[6].mxu0  ;;  %v218_v35 = vpop.f32.mrb[6].mxu1  ;;  %686 = vrcp.f32 %v316_v24  ;;  %v901_v50 = vmul.f32 0.70710677, %v890_v41  ;;  %v420_v55 = vmul.f32 %v412_v42, %v300_v12 }
 0x149   :  { %v200_v36 = vpop.f32.mrb[7].mxu0  ;;  %v313_v37 = vadd.f32 1.0, %v305_v30  ;;  %v220_v39 = vpop.f32.mrb[7].mxu1  ;;  %v298_v40 = vand.u32 2147483647, %v887_v34  ;;  %v892_v43 = vadd.f32 %v625_v0, %v198_v32  ;;  %v894_v44 = vadd.f32 %v625_v0, %v218_v35 }
 0x14a   :  { %v317_v38 = vadd.f32 1.0, %v309_v31  ;;  %v413_v56 = vsub.f32 0.0, %v301_v26  ;;  %v302_v57 = vand.u32 2147483647, %v901_v50  ;;  %v424_v60 = vmul.f32 1.442695, %v416_v45 }
 0x14b   :  { %688 = vrcp.f32 %v313_v37  ;;  %v306_v47 = vmul.f32 0.3275911, %v298_v40  ;;  %v905_v52 = vmul.f32 0.70710677, %v892_v43  ;;  %v913_v58 = vmul.f32 0.70710677, %v894_v44 }
 0x14c   :  { %690 = vrcp.f32 %v317_v38  ;;  %v417_v61 = vmul.f32 %v409_v46, %v297_v25  ;;  %v410_v63 = vsub.f32 0.0, %v298_v40  ;;  %v310_v0 = vmul.f32 0.3275911, %v302_v57 }
 0x14d   :  { %v314_v51 = vadd.f32 1.0, %v306_v47  ;;  %v299_v62 = vand.u32 2147483647, %v905_v52  ;;  %v303_v1 = vand.u32 2147483647, %v913_v58  ;;  %v922_v2 = vsel %vm284_vm1, 1.0, %v808_v53 }
 0x14e   :  { %vm285_vm2 = vcmp.ge.f32.partialorder %v880_v20, 0.0  ;;  %v414_v3 = vsub.f32 0.0, %v302_v57  ;;  %v432_v7 = vmul.f32 1.442695, %v420_v55  ;;  %v421_v9 = vmul.f32 %v413_v56, %v301_v26 }
 0x14f   :  { %692 = vrcp.f32 %v314_v51  ;;  %v307_v4 = vmul.f32 0.3275911, %v299_v62  ;;  %v318_v10 = vadd.f32 1.0, %v310_v0  ;;  %v311_v11 = vmul.f32 0.3275911, %v303_v1 }
 0x150   :  { %694 = vpow2.f32 %v424_v60  ;;  %vm281_vm3 = vcmp.ge.f32.partialorder %v877_v19, 0.0  ;;  %v426_v12 = vmul.f32 1.442695, %v417_v61  ;;  %v418_v17 = vmul.f32 %v410_v63, %v298_v40 }
 0x151   :  { %v915_v59 = vpop.eup %684  ;;  %v315_v15 = vadd.f32 1.0, %v307_v4  ;;  %696 = vrcp.f32 %v318_v10  ;;  %v411_v18 = vsub.f32 0.0, %v299_v62  ;;  %v319_v21 = vadd.f32 1.0, %v311_v11 }
 0x152   :  { %v336_v5 = vmul.f32 1.0614054, %v915_v59  ;;  %v926_v6 = vpop.eup %686  ;;  %v422_v23 = vmul.f32 %v414_v3, %v302_v57  ;;  %v434_v26 = vmul.f32 1.442695, %v421_v9  ;;  %v415_v28 = vsub.f32 0.0, %v303_v1 }
 0x153   :  { %698 = vrcp.f32 %v315_v15  ;;  %v340_v25 = vmul.f32 1.0614054, %v926_v6  ;;  %v428_v33 = vmul.f32 1.442695, %v418_v17  ;;  %v419_v35 = vmul.f32 %v411_v18, %v299_v62 }
 0x154   :  { %v344_v8 = vadd.f32 -1.4531521, %v336_v5  ;;  %700 = vpow2.f32 %v432_v7  ;;  %v436_v38 = vmul.f32 1.442695, %v422_v23  ;;  %v423_v45 = vmul.f32 %v415_v28, %v303_v1 }
 0x155   :  { %v929_v16 = vpop.eup %688  ;;  %702 = vpow2.f32 %v426_v12  ;;  %v348_v31 = vadd.f32 -1.4531521, %v340_v25  ;;  %v946_v55 = vsel %vm285_vm2, 1.0, %v808_v53  ;;  %v430_v60 = vmul.f32 1.442695, %v419_v35 }
 0x156   :  { %v931_v22 = vpop.eup %690  ;;  %v352_v24 = vmul.f32 %v915_v59, %v344_v8  ;;  %v337_v32 = vmul.f32 1.0614054, %v929_v16  ;;  %704 = vrcp.f32 %v319_v21  ;;  %v438_v5 = vmul.f32 1.442695, %v423_v45 }
 0x157   :  { %v341_v29 = vmul.f32 1.0614054, %v931_v22  ;;  %v356_v40 = vmul.f32 %v926_v6, %v348_v31  ;;  %706 = vpow2.f32 %v434_v26  ;;  %v957_v7 = vsel %vm281_vm3, 1.0, %v808_v53 }
 0x158   :  { %v360_v30 = vadd.f32 1.4214138, %v352_v24  ;;  %v345_v42 = vadd.f32 -1.4531521, %v337_v32  ;;  %708 = vpow2.f32 %v428_v33  ;;  %vm282_vm4 = vcmp.ge.f32.partialorder %v887_v34, 0.0 }
 0x159   :  { %v349_v36 = vadd.f32 -1.4531521, %v341_v29  ;;  %v937_v37 = vpop.eup %692  ;;  %v364_v56 = vadd.f32 1.4214138, %v356_v40  ;;  %710 = vpow2.f32 %v436_v38  ;;  %vm286_vm5 = vcmp.ge.f32.partialorder %v901_v50, 0.0 }
 0x15a   :  { %v368_v39 = vmul.f32 %v915_v59, %v360_v30  ;;  %v338_v47 = vmul.f32 1.0614054, %v937_v37  ;;  %v353_v57 = vmul.f32 %v929_v16, %v345_v42  ;;  %v695_v63 = vpop.eup %694  ;;  %712 = vpow2.f32 %v430_v60 }
 0x15b   :  { %v357_v46 = vmul.f32 %v931_v22, %v349_v36  ;;  %v372_v1 = vmul.f32 %v926_v6, %v364_v56  ;;  %v951_v4 = vpop.eup %696  ;;  %714 = vpow2.f32 %v438_v5  ;;  %vm283_vm6 = vcmp.ge.f32.partialorder %v905_v52, 0.0 }
 0x15c   :  { %v376_v51 = vadd.f32 -0.28449672, %v368_v39  ;;  %v346_v62 = vadd.f32 -1.4531521, %v338_v47  ;;  %v361_v3 = vadd.f32 1.4214138, %v353_v57 }
 0x15d   :  { %v365_v61 = vadd.f32 1.4214138, %v357_v46  ;;  %v960_v10 = vpop.eup %698  ;;  %v380_v12 = vadd.f32 -0.28449672, %v372_v1  ;;  %v342_v8 = vmul.f32 1.0614054, %v951_v4 }
 0x15e   :  { %v384_v0 = vmul.f32 %v915_v59, %v376_v51  ;;  %v354_v9 = vmul.f32 %v937_v37, %v346_v62  ;;  %v369_v15 = vmul.f32 %v929_v16, %v361_v3  ;;  %v701_v17 = vpop.eup %700  ;;  %v339_v23 = vmul.f32 1.0614054, %v960_v10 }
 0x15f   :  { %v373_v20 = vmul.f32 %v931_v22, %v365_v61  ;;  %v703_v24 = vpop.eup %702  ;;  %v388_v25 = vmul.f32 %v926_v6, %v380_v12  ;;  %v350_v28 = vadd.f32 -1.4531521, %v342_v8  ;;  %v291_v50 = vsel %vm283_vm6, 1.0, %v808_v53 }
 0x160   :  { %v392_v11 = vadd.f32 0.2548296, %v384_v0  ;;  %v362_v21 = vadd.f32 1.4214138, %v354_v9  ;;  %v377_v26 = vadd.f32 -0.28449672, %v369_v15  ;;  %v967_v29 = vpop.eup %704 }
 0x161   :  { %v381_v18 = vadd.f32 -0.28449672, %v373_v20  ;;  %v347_v32 = vadd.f32 -1.4531521, %v339_v23  ;;  %v396_v35 = vadd.f32 0.2548296, %v388_v25  ;;  %v358_v38 = vmul.f32 %v951_v4, %v350_v28  ;;  %v707_v39 = vpop.eup %706 }
 0x162   :  { %v400_v19 = vmul.f32 %v915_v59, %v392_v11  ;;  %v370_v31 = vmul.f32 %v937_v37, %v362_v21  ;;  %v385_v36 = vmul.f32 %v929_v16, %v377_v26  ;;  %v343_v45 = vmul.f32 1.0614054, %v967_v29  ;;  %v709_v57 = vpop.eup %708 }
 0x163   :  { %v389_v30 = vmul.f32 %v931_v22, %v381_v18  ;;  %v355_v42 = vmul.f32 %v960_v10, %v347_v32  ;;  %v404_v47 = vmul.f32 %v926_v6, %v396_v35  ;;  %v366_v56 = vadd.f32 1.4214138, %v358_v38  ;;  %v711_v0 = vpop.eup %710 }
 0x164   :  { %v440_v33 = vmul.f32 %v695_v63, %v400_v19  ;;  %v378_v40 = vadd.f32 -0.28449672, %v370_v31  ;;  %v393_v51 = vadd.f32 0.2548296, %v385_v36  ;;  %v351_v63 = vadd.f32 -1.4531521, %v343_v45  ;;  %v713_v21 = vpop.eup %712 }
 0x165   :  { %v397_v59 = vadd.f32 0.2548296, %v389_v30  ;;  %v363_v62 = vadd.f32 1.4214138, %v355_v42  ;;  %v444_v3 = vmul.f32 %v701_v17, %v404_v47  ;;  %v374_v20 = vmul.f32 %v951_v4, %v366_v56  ;;  %v715_v30 = vpop.eup %714 }
 0x166   :  { %v448_v46 = vsub.f32 1.0, %v440_v33  ;;  %v386_v61 = vmul.f32 %v937_v37, %v378_v40  ;;  %v401_v5 = vmul.f32 %v929_v16, %v393_v51  ;;  %v359_v12 = vmul.f32 %v967_v29, %v351_v63 }
 0x167   :  { %v405_v60 = vmul.f32 %v931_v22, %v397_v59  ;;  %v371_v6 = vmul.f32 %v960_v10, %v363_v62  ;;  %v452_v22 = vsub.f32 1.0, %v444_v3  ;;  %v382_v18 = vadd.f32 -0.28449672, %v374_v20 }
 0x168   :  { %v456_v1 = vmul.f32 %v448_v46, %v909_v54  ;;  %v394_v11 = vadd.f32 0.2548296, %v386_v61  ;;  %v441_v8 = vmul.f32 %v703_v24, %v401_v5  ;;  %v367_v17 = vadd.f32 1.4214138, %v359_v12 }
 0x169   :  { %v445_v9 = vmul.f32 %v707_v39, %v405_v60  ;;  %v379_v54 = vadd.f32 -0.28449672, %v371_v6  ;;  %v460_v25 = vmul.f32 %v452_v22, %v922_v2  ;;  %v390_v28 = vmul.f32 %v951_v4, %v382_v18 }
 0x16a   :  { %v464_v15 = vadd.f32 1.0, %v456_v1  ;;  %v402_v19 = vmul.f32 %v937_v37, %v394_v11  ;;  %v449_v26 = vsub.f32 1.0, %v441_v8  ;;  %v375_v33 = vmul.f32 %v967_v29, %v367_v17 }
 0x16b   :  { %v453_v23 = vsub.f32 1.0, %v445_v9  ;;  %v387_v24 = vmul.f32 %v960_v10, %v379_v54  ;;  %v269_v37 = vmul.f32 0.5, %v874_v14  ;;  %v468_v35 = vadd.f32 1.0, %v460_v25 }
 0x16c   :  { %v986_v16 = vmul.f32 %v464_v15, %v896_v48  ;;  %v442_v32 = vmul.f32 %v709_v57, %v402_v19  ;;  %v457_v48 = vmul.f32 %v449_v26, %v957_v7  ;;  %v398_v36 = vadd.f32 0.2548296, %v390_v28 }
 0x16d   :  { %v461_v31 = vmul.f32 %v453_v23, %v946_v55  ;;  %v395_v39 = vadd.f32 0.2548296, %v387_v24  ;;  %v383_v59 = vadd.f32 -0.28449672, %v375_v33  ;;  %v476_v40 = vmul.f32 %v468_v35, %v898_v49 }
 0x16e   :  { %480 = vadd.xlane.f32.xlu0 %v986_v16  ;;  %v450_v38 = vsub.f32 1.0, %v442_v32  ;;  %v465_v55 = vadd.f32 1.0, %v457_v48  ;;  %v290_v42 = vsel %vm282_vm4, 1.0, %v808_v53  ;;  %v406_v45 = vmul.f32 %v951_v4, %v398_v36 }
 0x16f   :  { %v469_v2 = vadd.f32 1.0, %v461_v31  ;;  %v403_v47 = vmul.f32 %v960_v10, %v395_v39  ;;  %v391_v7 = vmul.f32 %v967_v29, %v383_v59  ;;  %v265_v51 = vmul.f32 0.5, %v872_v13 }
 0x170   :  { %v458_v46 = vmul.f32 %v450_v38, %v290_v42  ;;  %v266_v56 = vmul.f32 0.5, %v884_v27  ;;  %v446_v49 = vmul.f32 %v711_v0, %v406_v45  ;;  %v294_v10 = vsel %vm286_vm5, 1.0, %v808_v53 }
 0x171   :  { %v477_v14 = vmul.f32 %v469_v2, %v269_v37  ;;  %v443_v57 = vmul.f32 %v713_v21, %v403_v47  ;;  %v399_v4 = vadd.f32 0.2548296, %v391_v7  ;;  %v473_v60 = vmul.f32 %v465_v55, %v265_v51 }
 0x172   :  { %488 = vadd.xlane.f32.xlu0 %v476_v40  ;;  %v466_v34 = vadd.f32 1.0, %v458_v46  ;;  %v454_v61 = vsub.f32 1.0, %v446_v49  ;;  %vm287_vm7 = vcmp.ge.f32.partialorder %v913_v58, 0.0  ;;  %v270_v1 = vmul.f32 0.5, %v890_v41 }
 0x173   :  { %490 = vadd.xlane.f32.xlu1 %v477_v14  ;;  %v451_v63 = vsub.f32 1.0, %v443_v57  ;;  %v407_v13 = vmul.f32 %v967_v29, %v399_v4  ;;  %v267_v5 = vmul.f32 0.5, %v892_v43  ;;  %v295_v6 = vsel %vm287_vm7, 1.0, %v808_v53 }
 0x174   :  { %v474_v62 = vmul.f32 %v466_v34, %v266_v56  ;;  %v462_v27 = vmul.f32 %v454_v61, %v294_v10  ;;  %v271_v15 = vmul.f32 0.5, %v894_v44 }
 0x175   :  { %v459_v52 = vmul.f32 %v451_v63, %v291_v50  ;;  %v447_v0 = vmul.f32 %v715_v30, %v407_v13 }
 0x176   :  { %482 = vadd.xlane.f32.xlu0 %v473_v60  ;;  %v470_v3 = vadd.f32 1.0, %v462_v27  ;;  %v626_v27 = vld [vmem:[%s1072_s3] ss:$0 sm:$0xff]  ;;  %s809_s3 = smov [#allocation8]  }
 0x177   :  { %484 = vadd.xlane.f32.xlu1 %v474_v62  ;;  %v467_v20 = vadd.f32 1.0, %v459_v52  ;;  %v455_v9 = vsub.f32 1.0, %v447_v0 }
 0x178   :  { %v478_v11 = vmul.f32 %v470_v3, %v270_v1  ;;  %v627_v3 = vld [vmem:[%s1073_s4] ss:$0 sm:$0xff]  ;;  %s612_s4 = sshll.u32 %s809_s3, 4  ;;  %s613_s4 = int_to_ptr.vmem [resolvable:$true] %s612_s4 }
 0x179   :  { %v475_v29 = vmul.f32 %v467_v20, %v267_v5  ;;  %v463_v12 = vmul.f32 %v455_v9, %v295_v6  ;;  %s776_s22 = scalar_lea.vmem %s613_s4, 1024  ;;  %p781_p3 = scmp.lt.s32.totalorder %s613_s4, %s613_s4 }
 0x17a   :  { %492 = vadd.xlane.f32.xlu0 %v478_v11  ;;  %p777_p2 = scmp.ne.s32.totalorder %s613_s4, %s776_s22  ;;  %p782_p4 = scmp.lt.s32.totalorder %s776_s22, %s776_s22 }
 0x17b   :  { %486 = vadd.xlane.f32.xlu1 %v475_v29  ;;  %v471_v58 = vadd.f32 1.0, %v463_v12 }
 0x17c   :  { %p783_p5 = por %p782_p4, %p781_p3 }
 0x17d   :  { %v479_v22 = vmul.f32 %v471_v58, %v271_v15 }
 0x17e   :  { %p784_p6 = pnand %p783_p5, %p777_p2 }
 0x17f   :  { %494 = vadd.xlane.f32.xlu1 %v479_v22 }
 0x1fb   :  { %v481_v8 = vpop.xlane.xlu0 %480 }
 0x1fc   :  { %v497_v18 = vmul.f32 0.0078125, %v481_v8 }
 0x1fe   :  { %v505_v41 = vsub.f32 %v986_v16, %v497_v18 }
 0x1ff   :  { %v489_v21 = vpop.xlane.xlu0 %488 }
 0x200   :  { %v491_v43 = vpop.xlane.xlu1 %490  ;;  %v501_v23 = vmul.f32 0.0078125, %v489_v21  ;;  %v513_v19 = vmul.f32 %v505_v41, %v505_v41 }
 0x201   :  { %v502_v17 = vmul.f32 0.0078125, %v491_v43 }
 0x202   :  { %v1016_v54 = vsub.f32 %v476_v40, %v501_v23  ;;  %521 = vadd.xlane.f32.xlu0 %v513_v19 }
 0x203   :  { %v483_v53 = vpop.xlane.xlu0 %482  ;;  %v1024_v16 = vsub.f32 %v477_v14, %v502_v17 }
 0x204   :  { %v498_v25 = vmul.f32 0.0078125, %v483_v53  ;;  %v485_v26 = vpop.xlane.xlu1 %484  ;;  %v517_v44 = vmul.f32 %v1016_v54, %v1016_v54 }
 0x205   :  { %v499_v28 = vmul.f32 0.0078125, %v485_v26  ;;  %v518_v2 = vmul.f32 %v1024_v16, %v1024_v16 }
 0x206   :  { %v1020_v30 = vsub.f32 %v473_v60, %v498_v25  ;;  %529 = vadd.xlane.f32.xlu0 %v517_v44 }
 0x207   :  { %v1022_v31 = vsub.f32 %v474_v62, %v499_v28  ;;  %v493_v24 = vpop.xlane.xlu0 %492 }
 0x208   :  { %v514_v32 = vmul.f32 %v1020_v30, %v1020_v30  ;;  %v503_v37 = vmul.f32 0.0078125, %v493_v24  ;;  %v487_v35 = vpop.xlane.xlu1 %486 }
 0x209   :  { %v515_v33 = vmul.f32 %v1022_v31, %v1022_v31  ;;  %v500_v48 = vmul.f32 0.0078125, %v487_v35 }
 0x20a   :  { %523 = vadd.xlane.f32.xlu1 %v514_v32  ;;  %v1030_v36 = vsub.f32 %v478_v11, %v503_v37 }
 0x20b   :  { %525 = vadd.xlane.f32.xlu0 %v515_v33  ;;  %v1034_v38 = vsub.f32 %v475_v29, %v500_v48 }
 0x20c   :  { %v495_v39 = vpop.xlane.xlu1 %494  ;;  %v519_v59 = vmul.f32 %v1030_v36, %v1030_v36 }
 0x20d   :  { %v504_v40 = vmul.f32 0.0078125, %v495_v39  ;;  %v516_v55 = vmul.f32 %v1034_v38, %v1034_v38 }
 0x20e   :  { %531 = vadd.xlane.f32.xlu1 %v518_v2 }
 0x20f   :  { %533 = vadd.xlane.f32.xlu0 %v519_v59  ;;  %v1040_v42 = vsub.f32 %v479_v22, %v504_v40 }
 0x211   :  { %v520_v45 = vmul.f32 %v1040_v42, %v1040_v42 }
 0x212   :  { %527 = vadd.xlane.f32.xlu1 %v516_v55 }
 0x216   :  { %535 = vadd.xlane.f32.xlu1 %v520_v45 }
 0x28f   :  { %v522_v14 = vpop.xlane.xlu0 %521 }
 0x290   :  { %v537_v46 = vmul.f32 0.0078125, %v522_v14 }
 0x292   :  { %v545_v47 = vadd.f32 1e-05, %v537_v46 }
 0x293   :  { %v530_v7 = vpop.xlane.xlu0 %529 }
 0x294   :  { %716 = vrsqrt.f32 %v545_v47  ;;  %v541_v51 = vmul.f32 0.0078125, %v530_v7 }
 0x296   :  { %v549_v56 = vadd.f32 1e-05, %v541_v51 }
 0x297   :  { %v524_v49 = vpop.xlane.xlu1 %523 }
 0x298   :  { %718 = vrsqrt.f32 %v549_v56  ;;  %v526_v34 = vpop.xlane.xlu0 %525  ;;  %v538_v57 = vmul.f32 0.0078125, %v524_v49 }
 0x299   :  { %v539_v4 = vmul.f32 0.0078125, %v526_v34 }
 0x29a   :  { %v546_v60 = vadd.f32 1e-05, %v538_v57 }
 0x29b   :  { %v547_v61 = vadd.f32 1e-05, %v539_v4  ;;  %v532_v62 = vpop.xlane.xlu1 %531 }
 0x29c   :  { %720 = vrsqrt.f32 %v546_v60  ;;  %v542_v10 = vmul.f32 0.0078125, %v532_v62  ;;  %v534_v63 = vpop.xlane.xlu0 %533 }
 0x29d   :  { %722 = vrsqrt.f32 %v547_v61  ;;  %v543_v50 = vmul.f32 0.0078125, %v534_v63 }
 0x29e   :  { %v717_v13 = vpop.eup %716  ;;  %v550_v52 = vadd.f32 1e-05, %v542_v10 }
 0x29f   :  { %v561_v0 = vmul.f32 %v717_v13, %v505_v41  ;;  %v528_v1 = vpop.xlane.xlu1 %527  ;;  %v551_v5 = vadd.f32 1e-05, %v543_v50 }
 0x2a0   :  { %724 = vrsqrt.f32 %v550_v52  ;;  %v540_v20 = vmul.f32 0.0078125, %v528_v1 }
 0x2a1   :  { %v576_v9 = vmul.f32 %v626_v27, %v561_v0  ;;  %726 = vrsqrt.f32 %v551_v5 }
 0x2a2   :  { %v719_v11 = vpop.eup %718  ;;  %v548_v6 = vadd.f32 1e-05, %v540_v20 }
 0x2a3   :  { %v591_v29 = vadd.f32 %v627_v3, %v576_v9  ;;  %v565_v12 = vmul.f32 %v719_v11, %v1016_v54  ;;  %v536_v15 = vpop.xlane.xlu1 %535 }
 0x2a4   :  { %728 = vrsqrt.f32 %v548_v6  ;;  %v544_v58 = vmul.f32 0.0078125, %v536_v15 }
 0x2a5   :  { %599 = vst [vmem:[#allocation8] sm:$0xff] %v591_v29  ;;  %v580_v22 = vmul.f32 %v626_v27, %v565_v12 }
 0x2a6   :  { %v721_v8 = vpop.eup %720  ;;  %v552_v18 = vadd.f32 1e-05, %v544_v58 }
 0x2a7   :  { %v723_v41 = vpop.eup %722  ;;  %v595_v21 = vadd.f32 %v627_v3, %v580_v22  ;;  %v562_v43 = vmul.f32 %v721_v8, %v1020_v30 }
 0x2a8   :  { %v563_v23 = vmul.f32 %v723_v41, %v1022_v31  ;;  %730 = vrsqrt.f32 %v552_v18 }
 0x2a9   :  { %603 = vst [vmem:[#allocation8 + $0x20] sm:$0xff] %v595_v21  ;;  %v577_v19 = vmul.f32 %v626_v27, %v562_v43 }
 0x2aa   :  { %v725_v53 = vpop.eup %724  ;;  %v578_v17 = vmul.f32 %v626_v27, %v563_v23 }
 0x2ab   :  { %v592_v25 = vadd.f32 %v627_v3, %v577_v19  ;;  %v566_v54 = vmul.f32 %v725_v53, %v1024_v16  ;;  %v727_v26 = vpop.eup %726 }
 0x2ac   :  { %v593_v44 = vadd.f32 %v627_v3, %v578_v17  ;;  %v567_v28 = vmul.f32 %v727_v26, %v1030_v36 }
 0x2ad   :  { %600 = vst [vmem:[#allocation8 + $0x8] sm:$0xff] %v592_v25  ;;  %v581_v32 = vmul.f32 %v626_v27, %v566_v54 }
 0x2ae   :  { %v729_v24 = vpop.eup %728  ;;  %601 = vst [vmem:[#allocation8 + $0x10] sm:$0xff] %v593_v44  ;;  %v582_v33 = vmul.f32 %v626_v27, %v567_v28 }
 0x2af   :  { %v596_v30 = vadd.f32 %v627_v3, %v581_v32  ;;  %v564_v31 = vmul.f32 %v729_v24, %v1034_v38 }
 0x2b0   :  { %v597_v37 = vadd.f32 %v627_v3, %v582_v33 }
 0x2b1   :  { %604 = vst [vmem:[#allocation8 + $0x28] sm:$0xff] %v596_v30  ;;  %v579_v35 = vmul.f32 %v626_v27, %v564_v31 }
 0x2b2   :  { %v731_v48 = vpop.eup %730  ;;  %605 = vst [vmem:[#allocation8 + $0x30] sm:$0xff] %v597_v37 }
 0x2b3   :  { %v594_v2 = vadd.f32 %v627_v3, %v579_v35  ;;  %v568_v16 = vmul.f32 %v731_v48, %v1040_v42 }
 0x2b5   :  { %602 = vst [vmem:[#allocation8 + $0x18] sm:$0xff] %v594_v2  ;;  %v583_v39 = vmul.f32 %v626_v27, %v568_v16 }
 0x2b7   :  { %v598_v36 = vadd.f32 %v627_v3, %v583_v39 }
 0x2b9   :  { %606 = vst [vmem:[#allocation8 + $0x38] sm:$0xff] %v598_v36 }
 0x2ba   :  { %787 = shalt.err (!%p784_p6)
}
 0x2bb   :  { %s788_s25 = scalar_lea.hbm %s1074_s5, 1024 }
 0x2bc   :  { %p789_p7 = scmp.ne.s32.totalorder %s1074_s5, %s788_s25  ;;  %p792_p8 = scmp.lt.u32.totalorder %s788_s25, %s1074_s5 }
 0x2be   :  { %p794_p9 = pnand %p792_p8, %p789_p7 }
 0x2c0   :  { %797 = shalt.err (!%p794_p9)
}
 0x2c1   :  { %s810_s30 = smov 128   ;;  %s811_s6 = smov 8  }
 0x2c2   :  { %618 = dma.vmem_to_hbm [thread:$0]  %s613_s4, 1024, %s1074_s5, [#allocation5], %s810_s30, %s810_s30, %s811_s6  }
 0x2c3   :  { %802 = dma.done.wait [#allocation5], 1024  }
 0x2c4   :  { %803 = vsyncadd [#allocation5], 4294966272 }
 0x2c5   :  { %622 = vsyncpa [#allocation4], 1 }
 0x2c6   :  { %623 = vsyncpa [#allocation7], 1 }
 0x2c7   :  { %624 = vsyncpa [#allocation5], 1 }

</bundles_post_ra>
